<compile_context>
chip_gen: v6e
topology: v6e:2x2x1
jax: 0.10.0
libtpu: 0.0.40
codegen_flags: <defaults>
</compile_context>

<pallas_src>
import jax
import jax.numpy as jnp
from jax.experimental import pallas as pl
from jax.experimental.pallas import tpu as pltpu


def _round_up(x, m):
    return ((x + m - 1) // m) * m


def _device_kind():
    try:
        return jax.devices()[0].device_kind.lower()
    except Exception:
        return ""


def _is_v7():
    kind = _device_kind()
    return ("v7" in kind) or ("7x" in kind)


def _vmem_capacity_bytes():
    try:
        return int(pltpu.get_tpu_info().vmem_capacity_bytes)
    except Exception:
        # v5e / v6e: 128 MiB per TensorCore; v7x: 64 MiB.
        return (64 << 20) if _is_v7() else (128 << 20)


def _moe_ffn_kernel(sched_ref, cnt_ref, gate_ref, x_ref, w13_ref, w2_ref,
                    o_ref, out_acc_ref):
    # sched_ref : SMEM (num_tiles, E) int32  compacted expert schedule per tile
    # cnt_ref   : SMEM (num_tiles,)   int32  number of active experts per tile
    # gate_ref  : (1, tm, 1) f32   router weight of the scheduled expert
    # x_ref     : (tm, D)          token tile
    # w13_ref   : (1, 1, D, 2*tn)  [w1^T | w3^T] tile of the scheduled expert
    # w2_ref    : (1, tn, D)       w2^T tile of the scheduled expert
    # o_ref     : (tm, D)          output tile (written once per token tile)
    # out_acc   : (tm, D) f32      gate-weighted accumulator (experts x inter)
    i = pl.program_id(0)
    e = pl.program_id(1)
    n = pl.program_id(2)
    last_e = pl.num_programs(1) - 1
    last_n = pl.num_programs(2) - 1

    @pl.when(jnp.logical_and(e == 0, n == 0))
    def _():
        out_acc_ref[...] = jnp.zeros_like(out_acc_ref)

    # Skip experts that no token in this tile routes to (compute + DMA saved;
    # the trailing schedule entries repeat the last active expert's index so
    # Pallas doesn't re-fetch weights for skipped steps).
    @pl.when(e < cnt_ref[i])
    def _():
        x = x_ref[...]
        w13 = w13_ref[0, 0]                      # (D, 2*tn)
        tn = w13.shape[-1] // 2

        # One fused MXU pass producing [h1 | h3] for this inter tile (f32).
        h = jnp.dot(x, w13, preferred_element_type=jnp.float32)
        h1 = h[:, :tn]
        h3 = h[:, tn:]

        # Fold the per-token router gate into the activation (per-row scalar,
        # mathematically identical); apply it in f32 before the cast so bf16
        # rounding stays comparable to the un-folded formulation.
        g = gate_ref[0].astype(jnp.float32)      # (tm, 1)
        gated = g * (h1 * jax.nn.sigmoid(h1) * h3)

        out_acc_ref[...] += jnp.dot(gated.astype(w2_ref.dtype), w2_ref[0],
                                    preferred_element_type=jnp.float32)

    @pl.when(jnp.logical_and(e == last_e, n == last_n))
    def _():
        o_ref[...] = out_acc_ref[...].astype(o_ref.dtype)


def pack_expert_weights(w1, w3, w2, *, tile_n=None, dtype=None):
    """Pack PyTorch-layout expert weights into the kernel's streamed layout.

    w1, w3: [E, I, D]; w2: [E, D, I].  Call ONCE at weight-load time.
    dtype: pass jnp.bfloat16 in production — halves weight HBM traffic and runs
           the MXU at full bf16 rate; accumulation stays f32 inside the kernel.

    Returns:
      w13t: [E, num_n, D, 2*tn]  with [.., :tn] = w1^T tile, [.., tn:] = w3^T tile
      w2t : [E, I_pad, D]        = w2.transpose(0, 2, 1), zero-padded on I
    """
    E, I, D = w1.shape
    if tile_n is None:
        # v7x is VMEM-tight (64 MiB): shrink the inter tile, not the token tile.
        tile_n = 256 if _is_v7() else 512
    # Force tn to a multiple of 128 so the h[:, :tn]/h[:, tn:] lane slices and
    # the (tm, tn) x (tn, D) down-proj are lane-tile aligned (no masked copies).
    tn = _round_up(max(128, min(tile_n, _round_up(I, 128))), 128)
    I_pad = _round_up(I, tn)

    if dtype is not None:
        w1, w3, w2 = w1.astype(dtype), w3.astype(dtype), w2.astype(dtype)
    if I_pad != I:
        pad_oi = [(0, 0), (0, I_pad - I), (0, 0)]
        w1 = jnp.pad(w1, pad_oi)
        w3 = jnp.pad(w3, pad_oi)
        w2 = jnp.pad(w2, [(0, 0), (0, 0), (0, I_pad - I)])
    num_n = I_pad // tn

    def to_tiles(w):  # [E, I_pad, D] -> [E, num_n, D, tn]
        return jnp.transpose(w, (0, 2, 1)).reshape(E, D, num_n, tn).transpose(0, 2, 1, 3)

    w13t = jnp.concatenate([to_tiles(w1), to_tiles(w3)], axis=-1)  # (E, num_n, D, 2*tn)
    w2t = jnp.transpose(w2, (0, 2, 1))                             # (E, I_pad, D)
    return w13t, w2t


def conditional_feed_forward(x, expert_indices, expert_weights, w13t, w2t,
                             *, tile_m=None, interpret=False):
    """x: [T, D]; expert_indices/expert_weights: [T, topk];
    w13t/w2t from pack_expert_weights."""
    T, D = x.shape
    E, num_n, D_w, two_tn = w13t.shape
    assert D_w == D, (D_w, D)
    tn = two_tn // 2
    I_pad = num_n * tn
    A = expert_indices.shape[1]
    is_v7 = _is_v7()
    is_v6 = "v6" in _device_kind()

    # Dense per-(token, expert) gate: g[t,e] = sum_a p[t,a] * [idx[t,a] == e].
    onehot = jax.nn.one_hot(expert_indices, E, dtype=jnp.float32)             # (T, A, E)
    gate = jnp.einsum('ta,tae->te', expert_weights.astype(jnp.float32), onehot)

    # Token tile: multiple of 8 sublanes (16 for 16-bit activations).
    sub = 16 if jnp.dtype(x.dtype).itemsize < 4 else 8
    if tile_m is None:
        # v6e needs tm >~ 330 to stay MXU-bound when re-streaming weights per
        # token tile; v5e is MXU-bound already at 256; v7x fits 256 in 64 MiB.
        tile_m = 512 if (is_v6 and T >= 1024) else 256
    tm = min(_round_up(T, sub), _round_up(tile_m, sub))
    if is_v7 and T > sub:
        # Guarantee >= 2 token tiles so the "parallel" token axis can shard
        # across v7x's two TensorCores (single-TC chips keep one big tile).
        tm = min(tm, _round_up(pl.cdiv(T, 2), sub))
    T_pad = _round_up(T, tm)
    if T_pad != T:
        x = jnp.pad(x, [(0, T_pad - T), (0, 0)])
        gate = jnp.pad(gate, [(0, T_pad - T), (0, 0)])
    num_tiles = T_pad // tm
    gate3 = jnp.transpose(gate)[:, :, None]                                   # (E, T_pad, 1)

    # Per-token-tile compacted expert schedule (scalar-prefetched into SMEM):
    # active experts first (ascending id); trailing slots repeat the last
    # active expert so the index_map returns a constant block index there.
    gate_tiles = gate.reshape(num_tiles, tm, E)
    active = gate_tiles.max(axis=1) > 0.0                                      # (num_tiles, E)
    cnt = jnp.sum(active.astype(jnp.int32), axis=-1)                           # (num_tiles,)
    order = jnp.argsort(jnp.where(active, 0, 1), axis=-1).astype(jnp.int32)
    pos = jnp.arange(E, dtype=jnp.int32)[None, :]
    last = jnp.take_along_axis(order, jnp.maximum(cnt - 1, 0)[:, None], axis=1)
    sched = jnp.where(pos < cnt[:, None], order, last)
    sched = jnp.where(cnt[:, None] > 0, sched, 0).astype(jnp.int32)

    grid = (num_tiles, E, num_n)

    wbytes = jnp.dtype(w13t.dtype).itemsize
    xbytes = jnp.dtype(x.dtype).itemsize
    flops = int(6 * T_pad * I_pad * D * A + 2 * T_pad * E)
    weight_bytes = int((w13t.size + w2t.size) * wbytes)
    # Weights are re-streamed once per token tile (dense-E upper bound).
    bytes_accessed = int(num_tiles * weight_bytes
                         + 2 * T_pad * D * xbytes
                         + gate3.size * 4 + sched.size * 4 + cnt.size * 4)
    cost = pl.CostEstimate(flops=flops,
                           transcendentals=int(T_pad * I_pad * A),
                           bytes_accessed=bytes_accessed)

    # VMEM plan: double-buffered pipeline blocks + one f32 accumulator + the
    # f32 matmul intermediates (h, gated).  Cap at 3/4 of physical VMEM so the
    # compiler keeps internal-scratch headroom (critical on v7x's 64 MiB).
    per_step = (tm * D * xbytes           # x tile
                + D * 2 * tn * wbytes     # packed w1|w3 tile
                + tn * D * wbytes         # w2 tile
                + tm * 4                  # gate tile
                + tm * D * xbytes)        # output tile
    intermediates = tm * 3 * tn * 4       # h (tm, 2tn) + gated (tm, tn), f32
    vmem_plan = 2 * per_step + tm * D * 4 + intermediates + (4 << 20)
    vmem_cap = (_vmem_capacity_bytes() * 3) // 4
    vmem_limit = int(min(max(vmem_plan, 32 << 20), vmem_cap))

    out = pl.pallas_call(
        _moe_ffn_kernel,
        out_shape=jax.ShapeDtypeStruct((T_pad, D), x.dtype),
        grid_spec=pltpu.PrefetchScalarGridSpec(
            num_scalar_prefetch=2,
            grid=grid,
            in_specs=[
                pl.BlockSpec((1, tm, 1),
                             lambda i, e, n, s_ref, c_ref: (s_ref[i, e], i, 0)),
                pl.BlockSpec((tm, D),
                             lambda i, e, n, s_ref, c_ref: (i, 0)),
                pl.BlockSpec((1, 1, D, 2 * tn),
                             lambda i, e, n, s_ref, c_ref: (s_ref[i, e], n, 0, 0)),
                pl.BlockSpec((1, tn, D),
                             lambda i, e, n, s_ref, c_ref: (s_ref[i, e], n, 0)),
            ],
            out_specs=pl.BlockSpec((tm, D),
                                   lambda i, e, n, s_ref, c_ref: (i, 0)),
            scratch_shapes=[
                pltpu.VMEM((tm, D), jnp.float32),   # gate-weighted accumulator
            ],
        ),
        compiler_params=pltpu.CompilerParams(
            dimension_semantics=("parallel", "arbitrary", "arbitrary"),
            vmem_limit_bytes=vmem_limit,
        ),
        cost_estimate=cost,
        interpret=interpret,
    )(sched, cnt, gate3, x, w13t, w2t)

    return out[:T]


def conditional_ffn_ref(x, expert_indices, expert_weights, w1, w3, w2):
    """Pure-JAX replica of the PyTorch forward (use_token_dispatcher=False)."""
    w1g = w1[expert_indices]          # (T, A, I, D)
    w3g = w3[expert_indices]          # (T, A, I, D)
    w2g = w2[expert_indices]          # (T, A, D, I)
    h1 = jax.nn.silu(jnp.einsum('ti,taoi->tao', x, w1g))
    h3 = jnp.einsum('ti,taoi->tao', x, w3g)
    eo = jnp.einsum('tao,taio->tai', h1 * h3, w2g)
    return jnp.einsum('tai,ta->ti', eo, expert_weights)


# TODO(synk): the use_token_dispatcher=True path (token permutation + grouped
# sequential_gemm) is not implemented; the module's default forward path is.

if __name__ == "__main__":
    # Small shapes consistent with ModelArgs: dim=16, intermediate=64, 8 experts, top-2.
    DIM, INTER, E, TOPK = 16, 64, 8, 2
    T = 16   # tokens (e.g. batch=2, seq=8 flattened)

    key = jax.random.PRNGKey(0)
    kx, k1, k2, k3, kr = jax.random.split(key, 5)

    x = jax.random.normal(kx, (T, DIM), dtype=jnp.float32)
    b1 = 1.0 / (DIM ** 0.5)
    b2 = 1.0 / (INTER ** 0.5)
    w1 = jax.random.uniform(k1, (E, INTER, DIM), jnp.float32, -b1, b1)
    w3 = jax.random.uniform(k3, (E, INTER, DIM), jnp.float32, -b1, b1)
    w2 = jax.random.uniform(k2, (E, DIM, INTER), jnp.float32, -b2, b2)

    # Router: top-k over softmaxed logits (how the module is driven upstream).
    logits = jax.random.normal(kr, (T, E), dtype=jnp.float32)
    probs = jax.nn.softmax(logits, axis=-1)
    expert_weights, expert_indices = jax.lax.top_k(probs, TOPK)
    expert_indices = expert_indices.astype(jnp.int32)

    ref = conditional_ffn_ref(x, expert_indices, expert_weights, w1, w3, w2)

    # f32 path: tight numerical check against the PyTorch-equivalent reference.
    w13t, w2t = pack_expert_weights(w1, w3, w2)            # one-time, load-time packing
    out = conditional_feed_forward(x, expert_indices, expert_weights, w13t, w2t)
    out = jax.block_until_ready(out)
    assert out.shape == (T, DIM), out.shape
    max_err = float(jnp.max(jnp.abs(out - ref)))
    assert jnp.allclose(out, ref, atol=1e-4, rtol=1e-4), max_err

    # bf16 production path: bf16 weights/activations, f32 in-kernel accumulation.
    w13t_bf, w2t_bf = pack_expert_weights(w1, w3, w2, dtype=jnp.bfloat16)
    out_bf = conditional_feed_forward(x.astype(jnp.bfloat16), expert_indices,
                                      expert_weights, w13t_bf, w2t_bf)
    out_bf = jax.block_until_ready(out_bf).astype(jnp.float32)
    max_err_bf = float(jnp.max(jnp.abs(out_bf - ref)))
    assert jnp.allclose(out_bf, ref, atol=7.5e-2, rtol=7.5e-2), max_err_bf

    print("KERNEL_OK")
</pallas_src>

<mosaic_0001>
module attributes {stable_mosaic.version = 11 : i64} {
  func.func @_moe_ffn_kernel(%arg0: i32, %arg1: i32, %arg2: i32, %arg3: memref<1x8xi32, #tpu.memory_space<smem>>, %arg4: memref<1xi32, #tpu.memory_space<smem>>, %arg5: memref<1x16x1xf32, #tpu.memory_space<vmem>>, %arg6: memref<16x16xf32, #tpu.memory_space<vmem>>, %arg7: memref<1x1x16x256xf32, #tpu.memory_space<vmem>>, %arg8: memref<1x128x16xf32, #tpu.memory_space<vmem>>, %arg9: memref<16x16xf32, #tpu.memory_space<vmem>>, %arg10: memref<16x16xf32, #tpu.memory_space<vmem>>) attributes {dimension_semantics = [#tpu.dimension_semantics<parallel>, #tpu.dimension_semantics<arbitrary>, #tpu.dimension_semantics<arbitrary>], iteration_bounds = array<i64: 1, 8, 1>, scalar_prefetch = 2 : i64, scratch_operands = 1 : i64, tpu.core_type = #tpu.core_type<tc>, window_params = [{transform_indices = @transform_0, window_bounds = array<i64: 1, 16, 1>}, {transform_indices = @transform_1, window_bounds = array<i64: 16, 16>}, {transform_indices = @transform_2, window_bounds = array<i64: 1, 1, 16, 256>}, {transform_indices = @transform_3, window_bounds = array<i64: 1, 128, 16>}, {transform_indices = @transform_4, window_bounds = array<i64: 16, 16>}]} {
    %c0_i32 = arith.constant 0 : i32
    %0 = arith.cmpi eq, %arg1, %c0_i32 : i32
    %c0_i32_0 = arith.constant 0 : i32
    %1 = arith.cmpi eq, %arg2, %c0_i32_0 : i32
    %2 = arith.andi %0, %1 : i1
    %3 = arith.extui %2 : i1 to i32
    %c0_i32_1 = arith.constant 0 : i32
    %4 = arith.cmpi ne, %3, %c0_i32_1 : i32
    scf.if %4 {
      %cst = arith.constant 0.000000e+00 : f32
      %15 = vector.broadcast %cst : f32 to vector<16x16xf32>
      %c0 = arith.constant 0 : index
      %c0_5 = arith.constant 0 : index
      %16 = vector.load %arg10[%c0, %c0_5] : memref<16x16xf32, #tpu.memory_space<vmem>>, vector<16x16xf32>
      tpu.vector_store %arg10[%c0, %c0_5], %15 {strides = array<i32>} : memref<16x16xf32, #tpu.memory_space<vmem>>, vector<16x16xf32>,
    } else {
    }
    %5 = arith.index_cast %arg0 : i32 to index
    %6 = memref.load %arg4[%5] : memref<1xi32, #tpu.memory_space<smem>>
    %7 = arith.cmpi slt, %arg1, %6 : i32
    %8 = arith.extui %7 : i1 to i32
    %c0_i32_2 = arith.constant 0 : i32
    %9 = arith.cmpi ne, %8, %c0_i32_2 : i32
    scf.if %9 {
      %c0 = arith.constant 0 : index
      %c0_5 = arith.constant 0 : index
      %15 = vector.load %arg6[%c0, %c0_5] : memref<16x16xf32, #tpu.memory_space<vmem>>, vector<16x16xf32>
      %c0_6 = arith.constant 0 : index
      %c0_7 = arith.constant 0 : index
      %c0_8 = arith.constant 0 : index
      %c0_9 = arith.constant 0 : index
      %16 = vector.load %arg7[%c0_6, %c0_7, %c0_8, %c0_9] : memref<1x1x16x256xf32, #tpu.memory_space<vmem>>, vector<1x1x16x256xf32>
      %17 = vector.shape_cast %16 : vector<1x1x16x256xf32> to vector<16x256xf32>
      %cst = arith.constant dense<0.000000e+00> : vector<16x256xf32>
      %18 = tpu.matmul %15, %17, %cst {dimension_numbers = #tpu.dot_dimension_numbers<[1], [0], [0], [1], [0, 0, 1, 1], [], []>} : vector<16x16xf32>, vector<16x256xf32>, vector<16x256xf32> -> vector<16x256xf32>
      %19 = vector.extract_strided_slice %18 {offsets = [0, 0], sizes = [16, 128], strides = [1, 1]} : vector<16x256xf32> to vector<16x128xf32>
      %20 = vector.extract_strided_slice %18 {offsets = [0, 128], sizes = [16, 128], strides = [1, 1]} : vector<16x256xf32> to vector<16x128xf32>
      %c0_10 = arith.constant 0 : index
      %c0_11 = arith.constant 0 : index
      %c0_12 = arith.constant 0 : index
      %21 = vector.load %arg5[%c0_10, %c0_11, %c0_12] : memref<1x16x1xf32, #tpu.memory_space<vmem>>, vector<1x16x1xf32>
      %22 = vector.shape_cast %21 : vector<1x16x1xf32> to vector<16x1xf32>
      %23 = arith.negf %19 : vector<16x128xf32>
      %24 = math.exp %23 : vector<16x128xf32>
      %cst_13 = arith.constant 1.000000e+00 : f32
      %25 = vector.broadcast %cst_13 : f32 to vector<16x128xf32>
      %26 = arith.addf %25, %24 : vector<16x128xf32>
      %27 = arith.divf %25, %26 : vector<16x128xf32>
      %28 = arith.mulf %19, %27 : vector<16x128xf32>
      %29 = arith.mulf %28, %20 : vector<16x128xf32>
      %30 = vector.broadcast %22 : vector<16x1xf32> to vector<16x128xf32>
      %31 = arith.mulf %30, %29 : vector<16x128xf32>
      %c0_14 = arith.constant 0 : index
      %c0_15 = arith.constant 0 : index
      %32 = vector.load %arg10[%c0_14, %c0_15] : memref<16x16xf32, #tpu.memory_space<vmem>>, vector<16x16xf32>
      %c0_16 = arith.constant 0 : index
      %c0_17 = arith.constant 0 : index
      %c0_18 = arith.constant 0 : index
      %33 = vector.load %arg8[%c0_16, %c0_17, %c0_18] : memref<1x128x16xf32, #tpu.memory_space<vmem>>, vector<1x128x16xf32>
      %34 = vector.shape_cast %33 : vector<1x128x16xf32> to vector<128x16xf32>
      %cst_19 = arith.constant dense<0.000000e+00> : vector<16x16xf32>
      %35 = tpu.matmul %31, %34, %cst_19 {dimension_numbers = #tpu.dot_dimension_numbers<[1], [0], [0], [1], [0, 0, 1, 1], [], []>} : vector<16x128xf32>, vector<128x16xf32>, vector<16x16xf32> -> vector<16x16xf32>
      %36 = arith.addf %32, %35 : vector<16x16xf32>
      %c0_20 = arith.constant 0 : index
      %c0_21 = arith.constant 0 : index
      %37 = vector.load %arg10[%c0_20, %c0_21] : memref<16x16xf32, #tpu.memory_space<vmem>>, vector<16x16xf32>
      tpu.vector_store %arg10[%c0_20, %c0_21], %36 {strides = array<i32>} : memref<16x16xf32, #tpu.memory_space<vmem>>, vector<16x16xf32>,
    } else {
    }
    %c7_i32 = arith.constant 7 : i32
    %10 = arith.cmpi eq, %arg1, %c7_i32 : i32
    %c0_i32_3 = arith.constant 0 : i32
    %11 = arith.cmpi eq, %arg2, %c0_i32_3 : i32
    %12 = arith.andi %10, %11 : i1
    %13 = arith.extui %12 : i1 to i32
    %c0_i32_4 = arith.constant 0 : i32
    %14 = arith.cmpi ne, %13, %c0_i32_4 : i32
    scf.if %14 {
      %c0 = arith.constant 0 : index
      %c0_5 = arith.constant 0 : index
      %15 = vector.load %arg10[%c0, %c0_5] : memref<16x16xf32, #tpu.memory_space<vmem>>, vector<16x16xf32>
      %c0_6 = arith.constant 0 : index
      %c0_7 = arith.constant 0 : index
      %16 = vector.load %arg9[%c0_6, %c0_7] : memref<16x16xf32, #tpu.memory_space<vmem>>, vector<16x16xf32>
      tpu.vector_store %arg9[%c0_6, %c0_7], %15 {strides = array<i32>} : memref<16x16xf32, #tpu.memory_space<vmem>>, vector<16x16xf32>,
    } else {
    }
    return
  }
  func.func @transform_0(%arg0: i32, %arg1: i32, %arg2: i32, %arg3: memref<1x8xi32, #tpu.memory_space<smem>>, %arg4: memref<1xi32, #tpu.memory_space<smem>>) -> (i32, i32, i32) {
    %0 = arith.index_cast %arg0 : i32 to index
    %1 = arith.index_cast %arg1 : i32 to index
    %2 = memref.load %arg3[%0, %1] : memref<1x8xi32, #tpu.memory_space<smem>>
    %c0_i32 = arith.constant 0 : i32
    %c0_i32_0 = arith.constant 0 : i32
    return %2, %arg0, %c0_i32 : i32, i32, i32
  }
  func.func @transform_1(%arg0: i32, %arg1: i32, %arg2: i32, %arg3: memref<1x8xi32, #tpu.memory_space<smem>>, %arg4: memref<1xi32, #tpu.memory_space<smem>>) -> (i32, i32) {
    %c0_i32 = arith.constant 0 : i32
    %c0_i32_0 = arith.constant 0 : i32
    return %arg0, %c0_i32 : i32, i32
  }
  func.func @transform_2(%arg0: i32, %arg1: i32, %arg2: i32, %arg3: memref<1x8xi32, #tpu.memory_space<smem>>, %arg4: memref<1xi32, #tpu.memory_space<smem>>) -> (i32, i32, i32, i32) {
    %0 = arith.index_cast %arg0 : i32 to index
    %1 = arith.index_cast %arg1 : i32 to index
    %2 = memref.load %arg3[%0, %1] : memref<1x8xi32, #tpu.memory_space<smem>>
    %c0_i32 = arith.constant 0 : i32
    %c0_i32_0 = arith.constant 0 : i32
    %c0_i32_1 = arith.constant 0 : i32
    return %2, %arg2, %c0_i32, %c0_i32_0 : i32, i32, i32, i32
  }
  func.func @transform_3(%arg0: i32, %arg1: i32, %arg2: i32, %arg3: memref<1x8xi32, #tpu.memory_space<smem>>, %arg4: memref<1xi32, #tpu.memory_space<smem>>) -> (i32, i32, i32) {
    %0 = arith.index_cast %arg0 : i32 to index
    %1 = arith.index_cast %arg1 : i32 to index
    %2 = memref.load %arg3[%0, %1] : memref<1x8xi32, #tpu.memory_space<smem>>
    %c0_i32 = arith.constant 0 : i32
    %c0_i32_0 = arith.constant 0 : i32
    return %2, %arg2, %c0_i32 : i32, i32, i32
  }
  func.func @transform_4(%arg0: i32, %arg1: i32, %arg2: i32, %arg3: memref<1x8xi32, #tpu.memory_space<smem>>, %arg4: memref<1xi32, #tpu.memory_space<smem>>) -> (i32, i32) {
    %c0_i32 = arith.constant 0 : i32
    %c0_i32_0 = arith.constant 0 : i32
    return %arg0, %c0_i32 : i32, i32
  }
}

</mosaic_0001>

<bundles_post_ra>
// kernel: tpu_custom_call.1
= control target key start
LH: loop header
LB: loop body
LE: loop exit
PB: predicated region body
PF: predicated region fallthrough
CT: control target
= control target key end

     0   :  { %s1204_s0 = inlined_call_operand.vmem [shape: s32[1,8], index: 0, kind: input, shape index: {}]   ;;  %s1205_s1 = inlined_call_operand.<no memory space> [shape: s32[1], index: 1, kind: input, shape index: {}]   ;;  %s1206_s2 = inlined_call_operand.vmem [shape: f32[8,16,1], index: 2, kind: input, shape index: {}]   ;;  %s1207_s3 = inlined_call_operand.vmem [shape: f32[16,16], index: 3, kind: input, shape index: {}]   ;;  %s1208_s4 = inlined_call_operand.vmem [shape: f32[8,1,16,256], index: 4, kind: input, shape index: {}]   ;;  %s1209_s5 = inlined_call_operand.vmem [shape: f32[8,128,16], index: 5, kind: input, shape index: {}]   ;;  %s1210_s6 = inlined_call_operand.hbm [shape: f32[16,16], index: 6, kind: output, shape index: {}]  }
   0x1   :  { %s11_s23 = sshll.u32 %s1204_s0, 4  ;;  %15 = sst [smem:[#allocation5]] %s1205_s1  ;;  %s12_s23 = int_to_ptr.vmem [resolvable:$true] %s11_s23 }
   0x2   :  { %s995_s26 = scalar_lea.vmem %s12_s23, 16  ;;  %p1000_p1 = scmp.lt.s32.totalorder %s12_s23, %s12_s23 }
   0x3   :  { %p996_p0 = scmp.ne.s32.totalorder %s12_s23, %s995_s26  ;;  %p1001_p2 = scmp.lt.s32.totalorder %s995_s26, %s995_s26 }
   0x5   :  { %p1002_p3 = por %p1001_p2, %p1000_p1 }
   0x7   :  { %p1003_p4 = pnand %p1002_p3, %p996_p0 }
   0x9   :  { %1006 = shalt.err (!%p1003_p4)  }
   0xa   :  { %s1061_s27 = smov [#allocation4]  }
   0xb   :  { %14 = dma.vmem_to_smem %s12_s23, 16, %s1061_s27, [#allocation3] }
   0xc   :  { %1043 = dma.done.wait [#allocation3], 16 }
   0xd   :  { %1044 = vsyncadd [#allocation3], 4294967280 }
   0xe   :  { %17 = sfence }
   0xf   :  { %18 = vsyncpa [#allocation7], 0  ;;  %s1109_s28 = smov 0   ;;  %s1111_s0 = smov 0  }
  0x10   :  { %s1113_s29 = smov 0  }
  0x11 LB: > { %s860_s1 = sadd.s32 4294967295, %s1059_s29   ;;  %s39_s30 = sadd.s32 1, %s1055_s0  ;;  %s1059_s29 = sphi %s1113_s29, %s24_s29   ;;  %s1055_s0 = sphi %s1111_s0, %s1213_s0   ;;  %s1051_s28 = sphi %s1109_s28, %s1212_s28  }
  0x12   : > { %p41_p5 = scmp.ge.s32.totalorder %s39_s30, 8  ;;  %p870_p6 = scmp.ge.s32.totalorder %s1059_s29, 1 }
  0x13   : > { %p338_p7 = scmp.lt.s32.totalorder %s1059_s29, 9 }
  0x14   : > { %s1215_s30 = smov (%p41_p5, %s39_s30), 0 }
  0x15   : > { %p339_p8 = pnand %p870_p6, %p338_p7 }
  0x16   : > { %s410_s7 = sshra.s32 (!%p339_p8), %s1051_s28, 7  ;;  %s415_s8 = sand.u32 (!%p339_p8), 127, %s1051_s28 }
  0x17   : > { %342 = sbr.rel (%p339_p8) target bundleno = 517 (0x205), region = 36  ;;  %s871_s9 = sshll.u32 (!%p339_p8), %s410_s7, 7 }
  0x18   : > { %p494_p9 = scmp.eq.s32.totalorder (!%p339_p8), %s1051_s28, 0  ;;  %s416_s10 = sadd.s32 (!%p339_p8), %s871_s9, %s415_s8 }
  0x19   : > { %s417_s11 = sld [smem:[#allocation4 + %s416_s10]] (!%p339_p8) }
  0x1a   : > { %s449_s12 = sld [smem:[#allocation4 + %s416_s10]] (!%p339_p8) }
  0x1b   : > { %s474_s13 = sld [smem:[#allocation4 + %s416_s10]] (!%p339_p8) }
  0x1c   : > { %vm500_vm0 = vcmask (%p494_p9), 130048   ;;  %v1062_v0 = vmov (%p494_p9), 0.0  }
  0x1d   : > { %501 = vst.msk [vmem:[#allocation2] sm:$0xff] (%p494_p9), %vm500_vm0, %v1062_v0  ;;  %502 = vst.msk [vmem:[#allocation2 + $0x8] sm:$0xff] (%p494_p9), %vm500_vm0, %v1062_v0 }
  0x1f   : > { %p419_p10 = scmp.lt.s32.totalorder %s417_s11, 7 }
  0x20   : > { %p450_p11 = scmp.lt.s32.totalorder %s449_s12, 7 }
  0x21   : > { %s1217_s11 = smov (!%p419_p10, %s417_s11), 7  ;;  %p476_p12 = scmp.lt.s32.totalorder %s474_s13, 7 }
  0x22   : > { %s1219_s12 = smov (!%p450_p11, %s449_s12), 7  ;;  %s891_s14 = sshll.u32 %s1217_s11, 4 }
  0x23   : > { %s1136_s17 = scalar_lea.vmem %s1206_s2, %s891_s14  ;;  %s892_s18 = sshll.u32 %s1219_s12, 5 }
  0x24   : > { %s458_s21 = scalar_lea.vmem %s1208_s4, %s892_s18  ;;  %s1221_s13 = smov (!%p476_p12, %s474_s13), 7 }
  0x25   : > { %s893_s22 = sshll.u32 %s1221_s13, 7  ;;  %499 = sbr.rel (!%p494_p9) target bundleno = 42 (0x2a), region = 40 }
  0x26   : > { %s1144_s25 = scalar_lea.vmem %s1209_s5, %s893_s22 }
  0x2a PF: > { %s503_s26 = sld [smem:[#allocation5]] }
  0x30   : > { %p881_p13 = scmp.ge.s32.totalorder %s1051_s28, %s503_s26 }
  0x32   : > { %507 = sbr.rel (%p881_p13) target bundleno = 493 (0x1ed), region = 44 }
  0x37   : > { %v513_v1 = vld [vmem:[%s458_s21 + $0x18] sm:$0xff]  ;;  %v512_v2 = vld [vmem:[%s458_s21 + $0x10] sm:$0xff]  ;;  %v511_v3 = vld [vmem:[%s458_s21 + $0x8] sm:$0xff]  ;;  %v1063_v5 = vmov 0.0   ;;  %vm514_vm1 = vcmask 130048   ;;  %v1064_v7 = vmov 0  }
  0x38   : > { %549 = vmatprep.subr.mxu0 %v513_v1  ;;  %v510_v4 = vld [vmem:[%s458_s21] sm:$0xff]  ;;  %585 = vmatprep.mubr.f32.mxu0 %v1063_v5  ;;  %v599_v9 = vld [vmem:[%s1136_s17 + $0x8] sm:$0xff]  ;;  %v645_v11 = vld [vmem:[%s1144_s25 + $0x78] sm:$0xff] }
  0x39   : > { %550 = vmatpush1.msra.mxu0 %v512_v2  ;;  %v508_v6 = vld [vmem:[%s1207_s3] sm:$0xff]  ;;  %986 = vset.pattern.permute.xlu0 %v1064_v7  ;;  %v509_v10 = vld [vmem:[%s1207_s3 + $0x8] sm:$0xff]  ;;  %v644_v12 = vld [vmem:[%s1144_s25 + $0x70] sm:$0xff] }
  0x3a   : > { %v598_v8 = vld [vmem:[%s1136_s17] sm:$0xff]  ;;  %551 = vmatprep.subr.mxu0 %v511_v3  ;;  %914 = vmatprep.subr.mxu1 %v645_v11  ;;  %v643_v13 = vld [vmem:[%s1144_s25 + $0x68] sm:$0xff]  ;;  %v641_v15 = vld [vmem:[%s1144_s25 + $0x58] sm:$0xff] }
  0x3b   : > { %618 = vperm.xlu0 %986, %v598_v8   ;;  %552 = vmatpush1.msra.mxu0 %v510_v4  ;;  %v642_v14 = vld [vmem:[%s1144_s25 + $0x60] sm:$0xff]  ;;  %v640_v16 = vld [vmem:[%s1144_s25 + $0x50] sm:$0xff]  ;;  %v639_v17 = vld [vmem:[%s1144_s25 + $0x48] sm:$0xff] }
  0x3c   : > { %882 = vmatmul.mubr.msk.f32.vlgmr.msra.gmra.mxu0 %vm514_vm1, %v508_v6  ;;  %915 = vmatpush3.msra.mxu1 %v645_v11  ;;  %v638_v18 = vld [vmem:[%s1144_s25 + $0x40] sm:$0xff]  ;;  %v637_v19 = vld [vmem:[%s1144_s25 + $0x38] sm:$0xff]  ;;  %v636_v20 = vld [vmem:[%s1144_s25 + $0x30] sm:$0xff] }
  0x3d   : > { %591 = vmatprep.mubr.f32.mxu0 %v1063_v5  ;;  %916 = vmatprep.subr.mxu1 %v644_v12  ;;  %v635_v21 = vld [vmem:[%s1144_s25 + $0x28] sm:$0xff]  ;;  %v634_v22 = vld [vmem:[%s1144_s25 + $0x20] sm:$0xff]  ;;  %v633_v23 = vld [vmem:[%s1144_s25 + $0x18] sm:$0xff] }
  0x3e   : > { %917 = vmatpush3.msra.mxu1 %v644_v12  ;;  %v632_v24 = vld [vmem:[%s1144_s25 + $0x10] sm:$0xff]  ;;  %v631_v25 = vld [vmem:[%s1144_s25 + $0x8] sm:$0xff]  ;;  %v630_v26 = vld [vmem:[%s1144_s25] sm:$0xff] }
  0x3f   : > { %623 = vperm.xlu0 %986, %v599_v9   ;;  %918 = vmatprep.subr.mxu1 %v643_v13  ;;  %v629_v47 = vld [vmem:[#allocation2 + $0x8] sm:$0xff]  ;;  %v628_v49 = vld [vmem:[#allocation2] sm:$0xff] }
  0x40   : > { %883 = vmatmul.mubr.msk.f32.gmra.mxu0 %vm514_vm1, %v509_v10  ;;  %919 = vmatpush3.msra.mxu1 %v643_v13 }
  0x41   : > { %920 = vmatprep.subr.mxu1 %v642_v14 }
  0x42   : > { %921 = vmatpush3.msra.mxu1 %v642_v14 }
  0x43   : > { %922 = vmatprep.subr.mxu1 %v641_v15 }
  0x44   : > { %923 = vmatpush3.msra.mxu1 %v641_v15 }
  0x45   : > { %924 = vmatprep.subr.mxu1 %v640_v16 }
  0x46   : > { %925 = vmatpush3.msra.mxu1 %v640_v16 }
  0x47   : > { %926 = vmatprep.subr.mxu1 %v639_v17 }
  0x48   : > { %927 = vmatpush3.msra.mxu1 %v639_v17 }
  0x49   : > { %928 = vmatprep.subr.mxu1 %v638_v18 }
  0x4a   : > { %929 = vmatpush3.msra.mxu1 %v638_v18 }
  0x4b   : > { %930 = vmatprep.subr.mxu1 %v637_v19 }
  0x4c   : > { %931 = vmatpush3.msra.mxu1 %v637_v19 }
  0x4d   : > { %932 = vmatprep.subr.mxu1 %v636_v20 }
  0x4e   : > { %933 = vmatpush3.msra.mxu1 %v636_v20 }
  0x4f   : > { %934 = vmatprep.subr.mxu1 %v635_v21 }
  0x50   : > { %935 = vmatpush3.msra.mxu1 %v635_v21 }
  0x51   : > { %936 = vmatprep.subr.mxu1 %v634_v22 }
  0x52   : > { %937 = vmatpush3.msra.mxu1 %v634_v22 }
  0x53   : > { %938 = vmatprep.subr.mxu1 %v633_v23 }
  0x54   : > { %939 = vmatpush3.msra.mxu1 %v633_v23 }
  0x55   : > { %940 = vmatprep.subr.mxu1 %v632_v24 }
  0x56   : > { %941 = vmatpush3.msra.mxu1 %v632_v24 }
  0x57   : > { %942 = vmatprep.subr.mxu1 %v631_v25 }
  0x58   : > { %943 = vmatpush3.msra.mxu1 %v631_v25 }
  0x59   : > { %944 = vmatprep.subr.mxu1 %v630_v26 }
  0x5a   : > { %945 = vmatpush3.msra.mxu1 %v630_v26 }
  0xb6   : > { %v619_v38 = vpop.permute.xlu0 %618 }
  0xba   : > { %v624_v45 = vpop.permute.xlu0 %623 }
  0xfc   : > { %v587_v27 = vpop.f32.mrf.mxu0 }
  0xfd   : > { %v884_v28 = vmul.f32 -1.442695, %v587_v27 }
  0xfe   : > { %v589_v29 = vpop.f32.mrf.mxu0 }
  0xff   : > { %987 = vpow2.f32 %v884_v28 }
 0x100   : > { %v593_v30 = vpop.f32.mrf.mxu0 }
 0x101   : > { %v885_v31 = vmul.f32 -1.442695, %v593_v30 }
 0x102   : > { %v595_v43 = vpop.f32.mrf.mxu0 }
 0x103   : > { %989 = vpow2.f32 %v885_v31 }
 0x10c   : > { %v988_v32 = vpop.eup %987 }
 0x10d   : > { %v606_v33 = vadd.f32 1.0, %v988_v32 }
 0x10f   : > { %991 = vrcp.f32 %v606_v33 }
 0x110   : > { %v990_v34 = vpop.eup %989 }
 0x111   : > { %v607_v35 = vadd.f32 1.0, %v990_v34 }
 0x113   : > { %993 = vrcp.f32 %v607_v35 }
 0x11c   : > { %v992_v36 = vpop.eup %991 }
 0x11d   : > { %v612_v37 = vmul.f32 %v992_v36, %v587_v27 }
 0x11f   : > { %v614_v39 = vmul.f32 %v612_v37, %v589_v29 }
 0x120   : > { %v994_v40 = vpop.eup %993 }
 0x121   : > { %v613_v41 = vmul.f32 %v994_v40, %v593_v30  ;;  %v626_v42 = vmul.f32 %v619_v38, %v614_v39 }
 0x123   : > { %v615_v44 = vmul.f32 %v613_v41, %v595_v43  ;;  %946 = vmatprep.mubr.f32.mxu1 %v626_v42 }
 0x125   : > { %v627_v46 = vmul.f32 %v624_v45, %v615_v44 }
 0x127   : > { %947 = vmatmul.mubr.f32.vlgmr.msra.gmra.mxu1 %v627_v46 }
 0x1e7   : > { %v948_v48 = vpop.f32.mrf.mxu1 }
 0x1e8   : > { %v722_v50 = vadd.f32 %v948_v48, %v629_v47 }
 0x1e9   : > { %v712_v51 = vpop.f32.mrf.mxu1 }
 0x1ea   : > { %724 = vst.msk [vmem:[#allocation2 + $0x8] sm:$0xff] %vm514_vm1, %v722_v50  ;;  %v721_v52 = vadd.f32 %v712_v51, %v628_v49 }
 0x1ec   : > { %723 = vst.msk [vmem:[#allocation2] sm:$0xff] %vm514_vm1, %v721_v52 }
 0x1ed PF: > { %p725_p0 = scmp.eq.s32.totalorder %s1051_s28, 7 }
 0x1ee   : > { %vm732_vm2 = vcmask (%p725_p0), 130048  }
 0x1ef   : > { %729 = sbr.rel (!%p725_p0) target bundleno = 501 (0x1f5), region = 48 }
 0x1f1   : > { %v731_v54 = vld [vmem:[#allocation2 + $0x8] sm:$0xff] (%p725_p0) }
 0x1f2   : > { %734 = vst.msk [vmem:[#allocation6 + $0x8] sm:$0xff] (%p725_p0), %vm732_vm2, %v731_v54 }
 0x1f3   : > { %v730_v53 = vld [vmem:[#allocation2] sm:$0xff] (%p725_p0) }
 0x1f4   : > { %733 = vst.msk [vmem:[#allocation6] sm:$0xff] %vm732_vm2, %v730_v53 }
 0x1f5 PF: > { %p1180_p1 = scmp.eq.s32.totalorder %s860_s1, 7  ;;  %s1065_s11 = smov [#allocation6]  }
 0x1f6   : > { %s744_s12 = sshll.u32 %s1065_s11, 4  ;;  %s745_s12 = int_to_ptr.vmem [resolvable:$true] %s744_s12 }
 0x1f7   : > { %s1007_s13 = scalar_lea.vmem %s745_s12, 256  ;;  %p1014_p5 = scmp.lt.s32.totalorder %s745_s12, %s745_s12 }
 0x1f8   : > { %p1008_p2 = scmp.ne.s32.totalorder %s745_s12, %s1007_s13  ;;  %p1015_p6 = scmp.lt.s32.totalorder %s1007_s13, %s1007_s13 }
 0x1fa   : > { %p1009_p3 = pnand %p1008_p2, %p1180_p1  ;;  %p1016_p7 = por %p1015_p6, %p1014_p5 }
 0x1fc   : > { %p1010_p4 = pneg %p1009_p3 }
 0x1fe   : > { %p1017_p8 = pnand %p1016_p7, %p1010_p4 }
 0x200   : > { %1020 = shalt.err (!%p1017_p8)
}
 0x201   : > { %s1066_s28 = smov 128   ;;  %s1067_s1 = smov 8  }
 0x202   : > { %950 = dma.vmem_to_hbm [thread:$0]  (%p1180_p1), %s745_s12, 256, %s1210_s6, [#allocation7], %s1066_s28, %s1066_s28, %s1067_s1  }
 0x203   : > { %1046 = dma.done.wait (%p1180_p1), [#allocation7], 256  }
 0x204   : > { %1048 = vsyncadd (%p1180_p1), [#allocation7], 4294967040 }
 0x205 PF: > { %s24_s29 = sadd.s32 1, %s1059_s29   ;;  %s1212_s28 = smov %s1055_s0 }
 0x206   : > { %p21_p9 = scmp.ge.s32.totalorder %s24_s29, 10   ;;  %s1213_s0 = smov %s1215_s30 }
 0x208   :  { %23 = sbr.rel (!%p21_p9) target bundleno = 17 (0x11), region = 85 }
 0x20d   :  { %760 = vsyncpa [#allocation7], 1 }
 0x20e   :  { %762 = vsyncpa [#allocation7 + $0x1], 1 }

</bundles_post_ra>
